<compile_context>
chip_gen: v5e
topology: v5e:2x2
jax: 0.10.0
libtpu: 0.0.40
codegen_flags: <defaults>
</compile_context>

<pallas_src>
import jax
import jax.numpy as jnp
from jax.experimental import pallas as pl
from jax.experimental.pallas import tpu as pltpu

_LANE = 128
_FOOTPRINT_BUDGET = 36 << 20   # pipeline buffers + f32 temporaries (<= ~40 MiB)
_VMEM_LIMIT_CAP = 48 << 20     # leave headroom below v7x's 64 MiB physical VMEM


def _round_up(n: int, m: int) -> int:
    return ((n + m - 1) // m) * m


def _cdiv(a: int, b: int) -> int:
    return -(-a // b)


def _sublane_multiple(dtype) -> int:
    # Packed sublane count: 8 for 4-byte, 16 for 2-byte, 32 for 1-byte dtypes.
    return max(8, 32 // jnp.dtype(dtype).itemsize)


def _make_kernel(feats: int, needs_mask: bool):
    """Kernel over one row tile with the full feature axis resident in VMEM."""

    def kernel(x_ref, o_ref):
        x = x_ref[...].astype(jnp.float32)            # native-dtype DMA, f32 math
        if needs_mask:
            # Defensive lane mask for non-128-multiple feature tails:
            # -inf contributes exp()=0, so max/sum over real lanes are unchanged.
            lane = jax.lax.broadcasted_iota(jnp.int32, x.shape, dimension=x.ndim - 1)
            x = jnp.where(lane < feats, x, -jnp.inf)
        c = jnp.max(x, axis=-1, keepdims=True)        # XLU cross-lane reduce
        e = jnp.exp(x - c)                            # EUP
        denom = jnp.sum(e, axis=-1, keepdims=True)    # XLU cross-lane reduce
        o_ref[...] = (e / denom).astype(o_ref.dtype)  # exact divide (compute slack)

    return kernel


def _pick_row_tile(rows: int, feats: int, dtype) -> int:
    sub = _sublane_multiple(dtype)
    itemsize = jnp.dtype(dtype).itemsize
    feats_vmem = _round_up(feats, _LANE)   # VMEM footprint is lane-padded
    # Per row: 2x double-buffered input + 2x double-buffered output (native
    # dtype) + ~2 f32 temporaries inside the kernel.
    per_row = feats_vmem * (4 * itemsize + 8)
    tile = max(sub, (_FOOTPRINT_BUDGET // per_row) // sub * sub)
    if tile >= rows:
        return rows                        # single full block (full-dim exemption)
    steps = _cdiv(rows, tile)
    # Prefer an even step count so v7x's 2 TensorCores split the parallel axis
    # evenly; on single-TC chips this costs at most one extra grid step.
    if steps > 1 and steps % 2 == 1:
        alt = _round_up(_cdiv(rows, steps + 1), sub)
        if sub <= alt < rows and _cdiv(rows, alt) % 2 == 0:
            tile = alt
    return tile


def _softmax_stable_2d(x: jax.Array) -> jax.Array:
    rows, feats = x.shape
    dtype = x.dtype
    itemsize = jnp.dtype(dtype).itemsize

    row_tile = _pick_row_tile(rows, feats, dtype)
    grid = (_cdiv(rows, row_tile),)
    needs_mask = (feats % _LANE) != 0
    kernel = _make_kernel(feats, needs_mask)

    feats_vmem = _round_up(feats, _LANE)
    block_elems = row_tile * feats_vmem
    # 2x(in + out) double buffers in native dtype + f32 temporaries + headroom.
    need = 4 * block_elems * itemsize + 2 * block_elems * 4 + (4 << 20)
    vmem_limit = int(min(_VMEM_LIMIT_CAP, max(32 << 20, need)))

    return pl.pallas_call(
        kernel,
        out_shape=jax.ShapeDtypeStruct((rows, feats), dtype),
        grid_spec=pltpu.PrefetchScalarGridSpec(
            num_scalar_prefetch=0,
            grid=grid,
            in_specs=[pl.BlockSpec((row_tile, feats), lambda i: (i, 0))],
            out_specs=pl.BlockSpec((row_tile, feats), lambda i: (i, 0)),
        ),
        compiler_params=pltpu.CompilerParams(
            dimension_semantics=("parallel",),
            vmem_limit_bytes=vmem_limit,
        ),
        cost_estimate=pl.CostEstimate(
            flops=int(5 * rows * feats),
            transcendentals=int(rows * feats),
            bytes_accessed=int(2 * rows * feats * itemsize),
        ),
    )(x)


def softmax_stable(x: jax.Array, dim: int | None = None) -> jax.Array:
    """Stable softmax over `dim` via a Pallas TPU kernel (PyTorch-module parity)."""
    # Match the original module's `if not dim: dim = -1` (so dim=0 also -> -1).
    if not dim:
        dim = -1
    if not jnp.issubdtype(x.dtype, jnp.floating):
        x = x.astype(jnp.float32)
    if x.ndim == 1:
        return _softmax_stable_2d(x[None, :])[0]

    last = x.ndim - 1
    norm_dim = dim % x.ndim
    x_moved = jnp.moveaxis(x, norm_dim, -1) if norm_dim != last else x
    lead, feats = x_moved.shape[:-1], x_moved.shape[-1]
    out = _softmax_stable_2d(x_moved.reshape((-1, feats))).reshape(lead + (feats,))
    if norm_dim != last:
        out = jnp.moveaxis(out, -1, norm_dim)
    return out


def _ref_softmax(x, dim):
    c = jnp.max(x, axis=dim, keepdims=True)
    e = jnp.exp(x - c)
    return e / jnp.sum(e, axis=dim, keepdims=True)


if __name__ == "__main__":
    key = jax.random.PRNGKey(0)
    k1, k2, k3 = jax.random.split(key, 3)

    # Small shape consistent with the module: 16 rows, 32 features, default dim=-1.
    x_small = jax.random.normal(k1, (16, 32), dtype=jnp.float32) * 5.0
    out_small = jax.block_until_ready(softmax_stable(x_small))
    ref_small = _ref_softmax(x_small, -1)
    assert out_small.shape == x_small.shape and out_small.dtype == x_small.dtype
    assert jnp.allclose(out_small, ref_small, atol=1e-5, rtol=1e-4)
    assert jnp.allclose(jnp.sum(out_small, axis=-1), 1.0, atol=1e-4)

    # Lane-aligned multi-row case (byte-sized tile path).
    x_large = jax.random.normal(k2, (512, 256), dtype=jnp.float32)
    out_large = jax.block_until_ready(softmax_stable(x_large))
    assert jnp.allclose(out_large, _ref_softmax(x_large, -1), atol=1e-5, rtol=1e-4)
    assert jnp.allclose(jnp.sum(out_large, axis=-1), 1.0, atol=1e-4)

    # 3-D input, non-last reduction axis (exercises moveaxis/reshape + lane mask).
    x_3d = jax.random.normal(k3, (2, 6, 40), dtype=jnp.float32)
    out_3d = jax.block_until_ready(softmax_stable(x_3d, dim=1))
    assert jnp.allclose(out_3d, _ref_softmax(x_3d, 1), atol=1e-5, rtol=1e-4)
    assert jnp.allclose(jnp.sum(out_3d, axis=1), 1.0, atol=1e-4)

    print("KERNEL_OK")
</pallas_src>

<mosaic_0001>
module attributes {stable_mosaic.version = 11 : i64} {
  func.func @kernel(%arg0: i32, %arg1: memref<16x32xf32, #tpu.memory_space<vmem>>, %arg2: memref<16x32xf32, #tpu.memory_space<vmem>>) attributes {dimension_semantics = [#tpu.dimension_semantics<parallel>], iteration_bounds = array<i64: 1>, scalar_prefetch = 0 : i64, scratch_operands = 0 : i64, tpu.core_type = #tpu.core_type<tc>, window_params = [{transform_indices = @transform_0, window_bounds = array<i64: 16, 32>}, {transform_indices = @transform_1, window_bounds = array<i64: 16, 32>}]} {
    %c0 = arith.constant 0 : index
    %c0_0 = arith.constant 0 : index
    %0 = vector.load %arg1[%c0, %c0_0] : memref<16x32xf32, #tpu.memory_space<vmem>>, vector<16x32xf32>
    %1 = tpu.iota {dimensions = array<i32: 1>} : vector<16x32xi32>
    %c32_i32 = arith.constant 32 : i32
    %2 = vector.broadcast %c32_i32 : i32 to vector<16x32xi32>
    %3 = arith.cmpi slt, %1, %2 : vector<16x32xi32>
    %cst = arith.constant 0xFF800000 : f32
    %4 = vector.broadcast %cst : f32 to vector<16x32xf32>
    %5 = arith.select %3, %0, %4 : vector<16x32xi1>, vector<16x32xf32>
    %cst_1 = arith.constant dense<0xFF800000> : vector<16xf32>
    %6 = vector.multi_reduction <maximumf>, %5, %cst_1 [1] : vector<16x32xf32> to vector<16xf32>
    %7 = vector.shape_cast %6 : vector<16xf32> to vector<16x1xf32>
    %8 = vector.broadcast %7 : vector<16x1xf32> to vector<16x32xf32>
    %9 = arith.subf %5, %8 : vector<16x32xf32>
    %10 = math.exp %9 : vector<16x32xf32>
    %cst_2 = arith.constant dense<0.000000e+00> : vector<16xf32>
    %11 = vector.multi_reduction <add>, %10, %cst_2 [1] : vector<16x32xf32> to vector<16xf32>
    %12 = vector.shape_cast %11 : vector<16xf32> to vector<16x1xf32>
    %13 = vector.broadcast %12 : vector<16x1xf32> to vector<16x32xf32>
    %14 = arith.divf %10, %13 : vector<16x32xf32>
    %c0_3 = arith.constant 0 : index
    %c0_4 = arith.constant 0 : index
    %15 = vector.load %arg2[%c0_3, %c0_4] : memref<16x32xf32, #tpu.memory_space<vmem>>, vector<16x32xf32>
    tpu.vector_store %arg2[%c0_3, %c0_4], %14 {strides = array<i32>} : memref<16x32xf32, #tpu.memory_space<vmem>>, vector<16x32xf32>,
    return
  }
  func.func @transform_0(%arg0: i32) -> (i32, i32) {
    %c0_i32 = arith.constant 0 : i32
    %c0_i32_0 = arith.constant 0 : i32
    return %arg0, %c0_i32 : i32, i32
  }
  func.func @transform_1(%arg0: i32) -> (i32, i32) {
    %c0_i32 = arith.constant 0 : i32
    %c0_i32_0 = arith.constant 0 : i32
    return %arg0, %c0_i32 : i32, i32
  }
}

</mosaic_0001>

<bundles_post_ra>
// kernel: tpu_custom_call.1
= control target key start
LH: loop header
LB: loop body
LE: loop exit
PB: predicated region body
PF: predicated region fallthrough
CT: control target
= control target key end

     0   :  { %6 = vsyncpa [#allocation3], 0  ;;  %s198_s0 = inlined_call_operand.hbm [shape: f32[16,32], index: 0, kind: input, shape index: {}]   ;;  %s199_s1 = inlined_call_operand.hbm [shape: f32[16,32], index: 1, kind: output, shape index: {}]  }
   0x1   :  { %7 = vsyncpa [#allocation4], 0  ;;  %s12_s8 = sshll.u32 %s198_s0, 4  ;;  %s166_s9 = smov [#allocation2]   ;;  %s13_s8 = int_to_ptr.hbm [resolvable:$true] %s12_s8 }
   0x2   :  { %s14_s10 = sshll.u32 %s166_s9, 4  ;;  %s167_s11 = smov 128   ;;  %s15_s10 = int_to_ptr.vmem [resolvable:$true] %s14_s10 }
   0x3   :  { %s168_s12 = smov 8  }
   0x4   :  { %20 = dma.hbm_to_vmem [thread:$0]  %s13_s8, 256, %s15_s10, [#allocation3], %s167_s11, %s167_s11, %s168_s12  }
   0x5   :  { %162 = dma.done.wait [#allocation3], 256  }
   0x6   :  { %163 = vsyncadd [#allocation3], 4294967040  ;;  %v27_v0 = vlaneseq  ;;  %vm32_vm1 = vcmask 261120   ;;  %v25_v2 = vld [vmem:[#allocation2] sm:$0xff]  ;;  %v26_v5 = vld [vmem:[#allocation2 + $0x8] sm:$0xff]  ;;  %s169_s0 = smov [#allocation5]  }
   0x7   :  { %s87_s13 = sshll.u32 %s169_s0, 4  ;;  %s89_s16 = sshll.u32 %s199_s1, 4  ;;  %s88_s13 = int_to_ptr.vmem [resolvable:$true] %s87_s13  ;;  %s90_s16 = int_to_ptr.hbm [resolvable:$true] %s89_s16 }
   0x8   :  { %v28_v1 = vand.u32 127, %v27_v0 }
   0xa   :  { %vm29_vm0 = vcmp.lt.s32.totalorder %v28_v1, 32 }
   0xb   :  { %v30_v3 = vsel %vm29_vm0, %v25_v2, -inf  ;;  %v31_v6 = vsel %vm29_vm0, %v26_v5, -inf }
   0xc   :  { %v33_v4 = vsel %vm32_vm1, %v30_v3, -inf  ;;  %v36_v7 = vsel %vm32_vm1, %v31_v6, -inf }
   0xd   :  { %34 = vmax.xlane.f32.xlu0 %v33_v4 }
  0x15   :  { %37 = vmax.xlane.f32.xlu0 %v36_v7 }
  0x80   :  { %v35_v8 = vpop.xlane.xlu0 %34 }
  0x81   :  { %v39_v9 = vsub.f32 %v30_v3, %v35_v8 }
  0x83   :  { %v41_v10 = vmul.f32 1.442695, %v39_v9 }
  0x85   :  { %106 = vpow2.f32 %v41_v10 }
  0x88   :  { %v38_v11 = vpop.xlane.xlu0 %37 }
  0x89   :  { %v40_v12 = vsub.f32 %v31_v6, %v38_v11 }
  0x8b   :  { %v107_v13 = vpop.eup %106  ;;  %v43_v14 = vmul.f32 1.442695, %v40_v12 }
  0x8c   :  { %v45_v15 = vsel %vm32_vm1, %v107_v13, 0.0 }
  0x8d   :  { %108 = vpow2.f32 %v43_v14  ;;  %46 = vadd.xlane.f32.xlu1 %v45_v15 }
  0x93   :  { %v109_v16 = vpop.eup %108 }
  0x94   :  { %v48_v17 = vsel %vm32_vm1, %v109_v16, 0.0 }
  0x95   :  { %49 = vadd.xlane.f32.xlu1 %v48_v17 }
 0x100   :  { %v47_v18 = vpop.xlane.xlu1 %46 }
 0x101   :  { %110 = vrcp.f32 %v47_v18  ;;  %v62_v23 = vand.u32 2147483648, %v47_v18  ;;  %v60_v25 = vand.u32 2147483647, %v47_v18  ;;  %vm56_vm3 = vweird.f32 %v47_v18 }
 0x103   :  { %v63_v28 = vor.u32 1.1754944e-38, %v62_v23  ;;  %vm61_vm5 = vcmp.eq.f32.partialorder %v60_v25, 8.507059e+37 }
 0x107   :  { %v111_v19 = vpop.eup %110 }
 0x108   :  { %v52_v20 = vmul.f32 %v111_v19, %v47_v18  ;;  %v50_v21 = vpop.xlane.xlu1 %49  ;;  %vm57_vm2 = vweird.f32 %v111_v19 }
 0x109   :  { %112 = vrcp.f32 %v50_v21  ;;  %vm58_vm4 = vmor %vm56_vm3, %vm57_vm2  ;;  %v77_v34 = vand.u32 2147483648, %v50_v21  ;;  %v75_v36 = vand.u32 2147483647, %v50_v21  ;;  %vm71_vm7 = vweird.f32 %v50_v21 }
 0x10a   :  { %v53_v22 = vsub.f32 1.0, %v52_v20 }
 0x10b   :  { %v78_v38 = vor.u32 1.1754944e-38, %v77_v34  ;;  %vm76_vm9 = vcmp.eq.f32.partialorder %v75_v36, 8.507059e+37 }
 0x10c   :  { %v54_v24 = vmul.f32 %v111_v19, %v53_v22 }
 0x10e   :  { %v55_v26 = vadd.f32 %v111_v19, %v54_v24 }
 0x10f   :  { %v113_v27 = vpop.eup %112 }
 0x110   :  { %v59_v29 = vsel %vm58_vm4, %v111_v19, %v55_v26  ;;  %v67_v30 = vmul.f32 %v113_v27, %v50_v21  ;;  %vm72_vm6 = vweird.f32 %v113_v27 }
 0x111   :  { %v64_v31 = vsel %vm61_vm5, %v63_v28, %v59_v29  ;;  %vm73_vm8 = vmor %vm71_vm7, %vm72_vm6 }
 0x112   :  { %v68_v32 = vsub.f32 1.0, %v67_v30  ;;  %v65_v33 = vmul.f32 %v107_v13, %v64_v31 }
 0x114   :  { %v69_v35 = vmul.f32 %v113_v27, %v68_v32  ;;  %81 = vst.msk [vmem:[#allocation5] sm:$0xff] %vm32_vm1, %v65_v33 }
 0x116   :  { %v70_v37 = vadd.f32 %v113_v27, %v69_v35 }
 0x118   :  { %v74_v39 = vsel %vm73_vm8, %v113_v27, %v70_v37 }
 0x119   :  { %v79_v40 = vsel %vm76_vm9, %v78_v38, %v74_v39 }
 0x11a   :  { %v80_v41 = vmul.f32 %v109_v16, %v79_v40 }
 0x11c   :  { %82 = vst.msk [vmem:[#allocation5 + $0x8] sm:$0xff] %vm32_vm1, %v80_v41 }
 0x11d   :  { %95 = dma.vmem_to_hbm [thread:$0]  %s88_s13, 256, %s90_s16, [#allocation4], %s167_s11, %s167_s11, %s168_s12  }
 0x11e   :  { %164 = dma.done.wait [#allocation4], 256  }
 0x11f   :  { %165 = vsyncadd [#allocation4], 4294967040 }
 0x120   :  { %100 = vsyncpa [#allocation3], 1 }
 0x121   :  { %101 = vsyncpa [#allocation4], 1 }

</bundles_post_ra>
